<compile_context>
chip_gen: v6e
topology: v6e:2x2x1
jax: 0.10.0
libtpu: 0.0.40
codegen_flags: <defaults>
</compile_context>

<pallas_src>
import functools

import jax
import jax.numpy as jnp
from jax.experimental import pallas as pl
from jax.experimental.pallas import tpu as pltpu

LANE = 128  # TPU lane width: hidden/output feature dims are zero-padded to this.


def _round_up(x, m):
    return ((x + m - 1) // m) * m


def qnetwork_kernel(x_ref, w_ref, b_ref, o_ref):
    """Forward pass for one (TB, SP) batch tile.

    x_ref: (TB, SP)       bf16  states; SP = state_size rounded up to 16
    w_ref: (3, 128, 128)  bf16  packed, zero-padded weights (W1, W2, W3), [in, out]
    b_ref: (3, 128)       f32   packed, zero-padded biases
    o_ref: (TB, 128)      bf16  lane-dense output; real Q-values in [:action_size]
    """
    x = x_ref[...]                      # (TB, SP) bf16
    sp = x_ref.shape[1]
    b = b_ref[...]                      # (3, 128) f32, loaded once, sliced in-register

    # fc1 + ReLU: narrow-K matmul against the first SP rows of resident W1.
    w1 = w_ref[0][:sp, :]
    h1 = jnp.dot(x, w1, preferred_element_type=jnp.float32)
    h1 = jnp.maximum(h1 + b[0:1, :], 0.0)
    # fc2 + ReLU
    h2 = jnp.dot(h1.astype(jnp.bfloat16), w_ref[1],
                 preferred_element_type=jnp.float32)
    h2 = jnp.maximum(h2 + b[1:2, :], 0.0)
    # fc3 (no activation); padded weight/bias lanes are 0, so padded output
    # lanes stay 0 through every layer.
    out = jnp.dot(h2.astype(jnp.bfloat16), w_ref[2],
                  preferred_element_type=jnp.float32)
    o_ref[...] = (out + b[2:3, :]).astype(o_ref.dtype)


def _choose_tile_b(batch):
    """Large tiles to amortize per-grid-step overhead, but keep >=2 grid steps
    whenever the batch allows so both of v7x's TensorCores get work."""
    if batch <= 256:
        return 128
    return int(min(2048, _round_up(-(-batch // 4), 128)))


@functools.partial(jax.jit, static_argnames=("action_size",))
def qnetwork_forward(x, w_packed, b_packed, action_size):
    """Pads batch (only if needed) to a tile multiple, runs the kernel, slices back."""
    batch, state_size = x.shape
    sp = max(16, _round_up(state_size, 16))      # bf16 sublane-packing granule
    tile_b = _choose_tile_b(batch)
    bp = _round_up(batch, tile_b)

    x_bf16 = x.astype(jnp.bfloat16)
    if bp != batch or sp != state_size:
        x_bf16 = jnp.pad(x_bf16, ((0, bp - batch), (0, sp - state_size)))

    out = pl.pallas_call(
        qnetwork_kernel,
        out_shape=jax.ShapeDtypeStruct((bp, LANE), jnp.bfloat16),
        grid_spec=pltpu.PrefetchScalarGridSpec(
            num_scalar_prefetch=0,
            grid=(bp // tile_b,),
            in_specs=[
                pl.BlockSpec((tile_b, sp), lambda i: (i, 0)),        # x: streamed, narrow K
                pl.BlockSpec((3, LANE, LANE), lambda i: (0, 0, 0)),  # weights: VMEM-resident
                pl.BlockSpec((3, LANE), lambda i: (0, 0)),           # biases: VMEM-resident
            ],
            out_specs=pl.BlockSpec((tile_b, LANE), lambda i: (i, 0)),
        ),
        compiler_params=pltpu.CompilerParams(
            dimension_semantics=("parallel",),  # v7x: batch tiles split across 2 TCs
        ),
    )(x_bf16, w_packed, b_packed)
    return out[:batch, :action_size].astype(jnp.float32)


def init_linear_params(key, in_features, out_features):
    """Deterministic init mimicking torch.nn.Linear (U(-1/sqrt(in), 1/sqrt(in)))."""
    kw, kb = jax.random.split(key)
    bound = 1.0 / jnp.sqrt(jnp.float32(in_features))
    # Stored as [in, out] (transposed once vs. PyTorch's [out, in]).
    w = jax.random.uniform(kw, (in_features, out_features), jnp.float32, -bound, bound)
    b = jax.random.uniform(kb, (out_features,), jnp.float32, -bound, bound)
    return w, b


def pack_params(params):
    """Zero-pad each (in, out) weight to (128, 128) and stack -> (3,128,128) bf16;
    zero-pad each bias to 128 and stack -> (3, 128) f32. Padded entries are 0 so
    ReLU keeps padded lanes inert through every layer."""
    w_packed = jnp.zeros((3, LANE, LANE), jnp.float32)
    b_packed = jnp.zeros((3, LANE), jnp.float32)
    for i, (w, b) in enumerate(params):
        w_packed = w_packed.at[i, : w.shape[0], : w.shape[1]].set(w)
        b_packed = b_packed.at[i, : b.shape[0]].set(b)
    return w_packed.astype(jnp.bfloat16), b_packed


if __name__ == "__main__":
    state_size = 16
    action_size = 4
    fc1_unit = 64
    fc2_unit = 32
    batch = 256  # -> tile_b=128, 2 grid steps (both v7x TCs get work); no padding needed

    key = jax.random.PRNGKey(0)
    kx, k1, k2, k3 = jax.random.split(key, 4)

    x = jax.random.normal(kx, (batch, state_size), jnp.float32)
    p1 = init_linear_params(k1, state_size, fc1_unit)
    p2 = init_linear_params(k2, fc1_unit, fc2_unit)
    p3 = init_linear_params(k3, fc2_unit, action_size)
    w_packed, b_packed = pack_params([p1, p2, p3])

    out = qnetwork_forward(x, w_packed, b_packed, action_size=action_size)
    out = jax.block_until_ready(out)
    assert out.shape == (batch, action_size)

    # Reference mirroring the kernel numerics (bf16 MXU operands, f32
    # accumulate / epilogue, bf16 output store).
    def dot_bf16(a, w):
        return jnp.dot(a.astype(jnp.bfloat16), w.astype(jnp.bfloat16),
                       preferred_element_type=jnp.float32)

    (w1, b1), (w2, b2), (w3, b3) = p1, p2, p3
    ref = jnp.maximum(dot_bf16(x, w1) + b1, 0.0)
    ref = jnp.maximum(dot_bf16(ref, w2) + b2, 0.0)
    ref = (dot_bf16(ref, w3) + b3).astype(jnp.bfloat16).astype(jnp.float32)
    assert jnp.allclose(out, ref, atol=1e-2, rtol=1e-2), \
        float(jnp.max(jnp.abs(out - ref)))

    # Loose sanity check against the exact f32 forward pass.
    ref32 = jnp.maximum(x @ w1 + b1, 0.0)
    ref32 = jnp.maximum(ref32 @ w2 + b2, 0.0)
    ref32 = ref32 @ w3 + b3
    assert jnp.allclose(out, ref32, atol=7e-2, rtol=7e-2)

    print("KERNEL_OK")
</pallas_src>

<mosaic_0001>
module attributes {stable_mosaic.version = 11 : i64} {
  func.func @qnetwork_kernel(%arg0: i32, %arg1: memref<128x16xbf16, #tpu.memory_space<vmem>>, %arg2: memref<3x128x128xbf16, #tpu.memory_space<vmem>>, %arg3: memref<3x128xf32, #tpu.memory_space<vmem>>, %arg4: memref<128x128xbf16, #tpu.memory_space<vmem>>) attributes {dimension_semantics = [#tpu.dimension_semantics<parallel>], iteration_bounds = array<i64: 2>, scalar_prefetch = 0 : i64, scratch_operands = 0 : i64, tpu.core_type = #tpu.core_type<tc>, window_params = [{transform_indices = @transform_0, window_bounds = array<i64: 128, 16>}, {pipeline_mode = #tpu.pipeline_mode<synchronous>, transform_indices = @transform_1, window_bounds = array<i64: 3, 128, 128>}, {pipeline_mode = #tpu.pipeline_mode<synchronous>, transform_indices = @transform_2, window_bounds = array<i64: 3, 128>}, {transform_indices = @transform_3, window_bounds = array<i64: 128, 128>}]} {
    %c0 = arith.constant 0 : index
    %c0_0 = arith.constant 0 : index
    %0 = vector.load %arg1[%c0, %c0_0] : memref<128x16xbf16, #tpu.memory_space<vmem>>, vector<128x16xbf16>
    %c0_1 = arith.constant 0 : index
    %c0_2 = arith.constant 0 : index
    %1 = vector.load %arg3[%c0_1, %c0_2] : memref<3x128xf32, #tpu.memory_space<vmem>>, vector<3x128xf32>
    %c0_3 = arith.constant 0 : index
    %c0_4 = arith.constant 0 : index
    %c0_5 = arith.constant 0 : index
    %2 = vector.load %arg2[%c0_3, %c0_4, %c0_5] : memref<3x128x128xbf16, #tpu.memory_space<vmem>>, vector<1x128x128xbf16>
    %3 = vector.shape_cast %2 : vector<1x128x128xbf16> to vector<128x128xbf16>
    %4 = vector.extract_strided_slice %3 {offsets = [0, 0], sizes = [16, 128], strides = [1, 1]} : vector<128x128xbf16> to vector<16x128xbf16>
    %cst = arith.constant dense<0.000000e+00> : vector<128x128xf32>
    %5 = tpu.matmul %0, %4, %cst {dimension_numbers = #tpu.dot_dimension_numbers<[1], [0], [0], [1], [0, 0, 1, 1], [], []>} : vector<128x16xbf16>, vector<16x128xbf16>, vector<128x128xf32> -> vector<128x128xf32>
    %6 = vector.extract_strided_slice %1 {offsets = [0, 0], sizes = [1, 128], strides = [1, 1]} : vector<3x128xf32> to vector<1x128xf32>
    %7 = vector.broadcast %6 : vector<1x128xf32> to vector<128x128xf32>
    %8 = arith.addf %5, %7 : vector<128x128xf32>
    %cst_6 = arith.constant 0.000000e+00 : f32
    %9 = vector.broadcast %cst_6 : f32 to vector<128x128xf32>
    %10 = arith.maximumf %8, %9 : vector<128x128xf32>
    %11 = arith.truncf %10 : vector<128x128xf32> to vector<128x128xbf16>
    %c1 = arith.constant 1 : index
    %c0_7 = arith.constant 0 : index
    %c0_8 = arith.constant 0 : index
    %12 = vector.load %arg2[%c1, %c0_7, %c0_8] : memref<3x128x128xbf16, #tpu.memory_space<vmem>>, vector<1x128x128xbf16>
    %13 = vector.shape_cast %12 : vector<1x128x128xbf16> to vector<128x128xbf16>
    %cst_9 = arith.constant dense<0.000000e+00> : vector<128x128xf32>
    %14 = tpu.matmul %11, %13, %cst_9 {dimension_numbers = #tpu.dot_dimension_numbers<[1], [0], [0], [1], [0, 0, 1, 1], [], []>} : vector<128x128xbf16>, vector<128x128xbf16>, vector<128x128xf32> -> vector<128x128xf32>
    %15 = vector.extract_strided_slice %1 {offsets = [1, 0], sizes = [1, 128], strides = [1, 1]} : vector<3x128xf32> to vector<1x128xf32>
    %16 = vector.broadcast %15 : vector<1x128xf32> to vector<128x128xf32>
    %17 = arith.addf %14, %16 : vector<128x128xf32>
    %cst_10 = arith.constant 0.000000e+00 : f32
    %18 = vector.broadcast %cst_10 : f32 to vector<128x128xf32>
    %19 = arith.maximumf %17, %18 : vector<128x128xf32>
    %20 = arith.truncf %19 : vector<128x128xf32> to vector<128x128xbf16>
    %c2 = arith.constant 2 : index
    %c0_11 = arith.constant 0 : index
    %c0_12 = arith.constant 0 : index
    %21 = vector.load %arg2[%c2, %c0_11, %c0_12] : memref<3x128x128xbf16, #tpu.memory_space<vmem>>, vector<1x128x128xbf16>
    %22 = vector.shape_cast %21 : vector<1x128x128xbf16> to vector<128x128xbf16>
    %cst_13 = arith.constant dense<0.000000e+00> : vector<128x128xf32>
    %23 = tpu.matmul %20, %22, %cst_13 {dimension_numbers = #tpu.dot_dimension_numbers<[1], [0], [0], [1], [0, 0, 1, 1], [], []>} : vector<128x128xbf16>, vector<128x128xbf16>, vector<128x128xf32> -> vector<128x128xf32>
    %24 = vector.extract_strided_slice %1 {offsets = [2, 0], sizes = [1, 128], strides = [1, 1]} : vector<3x128xf32> to vector<1x128xf32>
    %25 = vector.broadcast %24 : vector<1x128xf32> to vector<128x128xf32>
    %26 = arith.addf %23, %25 : vector<128x128xf32>
    %27 = arith.truncf %26 : vector<128x128xf32> to vector<128x128xbf16>
    %c0_14 = arith.constant 0 : index
    %c0_15 = arith.constant 0 : index
    %28 = vector.load %arg4[%c0_14, %c0_15] : memref<128x128xbf16, #tpu.memory_space<vmem>>, vector<128x128xbf16>
    tpu.vector_store %arg4[%c0_14, %c0_15], %27 {strides = array<i32>} : memref<128x128xbf16, #tpu.memory_space<vmem>>, vector<128x128xbf16>,
    return
  }
  func.func @transform_0(%arg0: i32) -> (i32, i32) {
    %c0_i32 = arith.constant 0 : i32
    %c0_i32_0 = arith.constant 0 : i32
    return %arg0, %c0_i32 : i32, i32
  }
  func.func @transform_1(%arg0: i32) -> (i32, i32, i32) {
    %c0_i32 = arith.constant 0 : i32
    %c0_i32_0 = arith.constant 0 : i32
    %c0_i32_1 = arith.constant 0 : i32
    %c0_i32_2 = arith.constant 0 : i32
    return %c0_i32, %c0_i32_0, %c0_i32_1 : i32, i32, i32
  }
  func.func @transform_2(%arg0: i32) -> (i32, i32) {
    %c0_i32 = arith.constant 0 : i32
    %c0_i32_0 = arith.constant 0 : i32
    %c0_i32_1 = arith.constant 0 : i32
    return %c0_i32, %c0_i32_0 : i32, i32
  }
  func.func @transform_3(%arg0: i32) -> (i32, i32) {
    %c0_i32 = arith.constant 0 : i32
    %c0_i32_0 = arith.constant 0 : i32
    return %arg0, %c0_i32 : i32, i32
  }
}

</mosaic_0001>

<bundles_post_ra>
// kernel: qnetwork_forward.1
= control target key start
LH: loop header
LB: loop body
LE: loop exit
PB: predicated region body
PF: predicated region fallthrough
CT: control target
= control target key end

     0   :  { %8 = vsyncpa [#allocation3], 0  ;;  %s1290_s12 = smov 0   ;;  %s1424_s0 = inlined_call_operand.vmem [shape: bf16[256,16], index: 0, kind: input, shape index: {}]   ;;  %s1425_s1 = inlined_call_operand.vmem [shape: bf16[3,128,128], index: 1, kind: input, shape index: {}]   ;;  %s1426_s2 = inlined_call_operand.hbm [shape: f32[3,128], index: 2, kind: input, shape index: {}]   ;;  %s1427_s3 = inlined_call_operand.vmem [shape: bf16[256,128], index: 3, kind: output, shape index: {}]  }
   0x1 LB: > { %s907_s13 = sadd.s32 4294967295, %s1267_s12   ;;  %p909_p0 = scmp.ge.s32.totalorder %s1267_s12, 1  ;;  %s1267_s12 = sphi %s1290_s12, %s14_s12  }
   0x2   : > { %p113_p1 = scmp.lt.s32.totalorder %s1267_s12, 3  ;;  %p1302_p3 = scmp.eq.s32.totalorder %s907_s13, 0 }
   0x3   : > { %s1269_s16 = smov [#allocation2]  }
   0x4   : > { %p1298_p2 = pnand %p909_p0, %p113_p1  ;;  %s129_s17 = sshll.u32 %s1269_s16, 4  ;;  %s130_s17 = int_to_ptr.vmem [resolvable:$true] %s129_s17 }
   0x5   : > { %s1242_s18 = scalar_lea.vmem %s130_s17, 64  ;;  %p1250_p10 = scmp.lt.s32.totalorder %s130_s17, %s130_s17 }
   0x6   : > { %p1191_p4 = pneg %p1298_p2  ;;  %p1243_p7 = scmp.ne.s32.totalorder %s130_s17, %s1242_s18 }
   0x7   : > { %p1251_p11 = scmp.lt.s32.totalorder %s1242_s18, %s1242_s18 }
   0x8   : > { %p1192_p5 = pnand %p1302_p3, %p1191_p4 }
   0x9   : > { %p1252_p12 = por %p1251_p11, %p1250_p10 }
   0xa   : > { %p1233_p6 = pneg %p1192_p5 }
   0xc   : > { %p1245_p8 = pnand %p1243_p7, %p1233_p6 }
   0xe   : > { %p1246_p9 = pneg %p1245_p8 }
  0x10   : > { %p1253_p13 = pnand %p1252_p12, %p1246_p9 }
  0x12   : > { %1256 = shalt.err (!%p1253_p13)
}
  0x13   : > { %1194 = dma.hbm_to_vmem [thread:$0]  (!%p1192_p5), %s1426_s2, 64, %s130_s17, [#allocation3]  }
  0x14   : > { %151 = sbr.rel (%p1298_p2) target bundleno = 674 (0x2a2), region = 32 }
  0x19   : > { %1262 = dma.done.wait (%p1302_p3), [#allocation3], 64  }
  0x1a   : > { %1264 = vsyncadd (%p1302_p3), [#allocation3], 4294967232  ;;  %s914_s21 = sshll.u32 %s907_s13, 4  ;;  %v1206_v0 = vld [vmem:[%s1425_s1] sm:$0xff]   ;;  %vm257_vm0 = vcmask 130048   ;;  %v1215_v5 = vld [vmem:[%s1425_s1 + $0x78] sm:$0xff]   ;;  %v207_v22 = vlaneseq }
  0x1b   : > { %p176_p0 = scmp.lt.s32.totalorder %s914_s21, 31  ;;  %1105 = vmatprep.subr.bf16.mxu0 %v1206_v0  ;;  %v1216_v6 = vld [vmem:[%s1425_s1 + $0x70] sm:$0xff]   ;;  %1123 = vmatprep.subr.bf16.mxu1 %v1215_v5  ;;  %v1217_v8 = vld [vmem:[%s1425_s1 + $0x68] sm:$0xff]   ;;  %v1218_v9 = vld [vmem:[%s1425_s1 + $0x60] sm:$0xff]  }
  0x1c   : > { %1106 = vmatpush3.bf16.msra.mxu0 %v1206_v0  ;;  %1124 = vmatpush3.bf16.msra.mxu1 %v1215_v5  ;;  %v1219_v12 = vld [vmem:[%s1425_s1 + $0x58] sm:$0xff]   ;;  %v1220_v14 = vld [vmem:[%s1425_s1 + $0x50] sm:$0xff]   ;;  %v1221_v15 = vld [vmem:[%s1425_s1 + $0x48] sm:$0xff]   ;;  %v1387_v23 = vshrl.u32 %v207_v22, 7 }
  0x1d   : > { %s1431_s21 = smov (!%p176_p0, %s914_s21), 31  ;;  %1125 = vmatprep.subr.bf16.mxu1 %v1216_v6  ;;  %v1222_v16 = vld [vmem:[%s1425_s1 + $0x40] sm:$0xff]   ;;  %v1223_v17 = vld [vmem:[%s1425_s1 + $0xb8] sm:$0xff]   ;;  %v1224_v18 = vld [vmem:[%s1425_s1 + $0xb0] sm:$0xff]  }
  0x1e   : > { %s915_s22 = sshll.u32 %s1431_s21, 2  ;;  %1155 = vmatprep.subr.bf16.mxu0 %v1223_v17  ;;  %v1225_v19 = vld [vmem:[%s1425_s1 + $0xa8] sm:$0xff]   ;;  %v1226_v20 = vld [vmem:[%s1425_s1 + $0xa0] sm:$0xff]   ;;  %v1227_v21 = vld [vmem:[%s1425_s1 + $0x98] sm:$0xff]   ;;  %v209_v24 = vsub.s32 0, %v1387_v23  ;;  %v422_v22 = vsub.s32 1, %v1387_v23 }
  0x1f   : > { %s1327_s25 = scalar_lea.vmem %s1424_s0, %s915_s22  ;;  %v1390_v25 = vld [vmem:[#allocation2] sm:$0x7]  ;;  %s1411_s11 = scalar_lea.vmem %s1427_s3, %s915_s22 }
  0x20   : > { %v1207_v1 = vld [vmem:[%s1327_s25] sm:$0xff]   ;;  %v1208_v2 = vld [vmem:[%s1327_s25 + $0x8] sm:$0xff]   ;;  %v1209_v3 = vld [vmem:[%s1327_s25 + $0x10] sm:$0xff]   ;;  %1126 = vmatpush3.bf16.msra.mxu1 %v1216_v6  ;;  %v210_v27 = vrot.slane %v1390_v25, %v209_v24 }
  0x21   : > { %1107 = vmatprep.mubr.msk.bf16.mxu0 %vm257_vm0, %v1207_v1  ;;  %v1210_v4 = vld [vmem:[%s1327_s25 + $0x18] sm:$0xff]   ;;  %v1211_v7 = vld [vmem:[%s1327_s25 + $0x20] sm:$0xff]   ;;  %v1212_v10 = vld [vmem:[%s1327_s25 + $0x28] sm:$0xff]   ;;  %1127 = vmatprep.subr.bf16.mxu1 %v1217_v8 }
  0x22   : > { %1108 = vmatmul.mubr.msk.bf16.vlgmr.msra.gmra.mxu0 %vm257_vm0, %v1208_v2  ;;  %v1213_v11 = vld [vmem:[%s1327_s25 + $0x30] sm:$0xff]   ;;  %v1214_v13 = vld [vmem:[%s1327_s25 + $0x38] sm:$0xff]  }
  0x23   : > { %1111 = vmatprep.mubr.msk.bf16.mxu0 %vm257_vm0, %v1209_v3  ;;  %1156 = vmatpush3.bf16.msra.mxu0 %v1223_v17 }
  0x24   : > { %1128 = vmatpush3.bf16.msra.mxu1 %v1217_v8  ;;  %1157 = vmatprep.subr.bf16.mxu0 %v1224_v18 }
  0x25   : > { %1129 = vmatprep.subr.bf16.mxu1 %v1218_v9 }
  0x27   : > { %1158 = vmatpush3.bf16.msra.mxu0 %v1224_v18 }
  0x28   : > { %1130 = vmatpush3.bf16.msra.mxu1 %v1218_v9  ;;  %1159 = vmatprep.subr.bf16.mxu0 %v1225_v19 }
  0x29   : > { %1131 = vmatprep.subr.bf16.mxu1 %v1219_v12 }
  0x2a   : > { %1112 = vmatmul.mubr.msk.bf16.gmra.mxu0 %vm257_vm0, %v1210_v4 }
  0x2b   : > { %1115 = vmatprep.mubr.msk.bf16.mxu0 %vm257_vm0, %v1211_v7  ;;  %1160 = vmatpush3.bf16.msra.mxu0 %v1225_v19  ;;  %v1228_v19 = vld [vmem:[%s1425_s1 + $0x90] sm:$0xff]  }
  0x2c   : > { %1132 = vmatpush3.bf16.msra.mxu1 %v1219_v12  ;;  %1161 = vmatprep.subr.bf16.mxu0 %v1226_v20 }
  0x2d   : > { %1133 = vmatprep.subr.bf16.mxu1 %v1220_v14 }
  0x2f   : > { %1162 = vmatpush3.bf16.msra.mxu0 %v1226_v20  ;;  %v1229_v20 = vld [vmem:[%s1425_s1 + $0x88] sm:$0xff]  }
  0x30   : > { %1134 = vmatpush3.bf16.msra.mxu1 %v1220_v14  ;;  %1163 = vmatprep.subr.bf16.mxu0 %v1227_v21 }
  0x31   : > { %1135 = vmatprep.subr.bf16.mxu1 %v1221_v15 }
  0x32   : > { %1116 = vmatmul.mubr.msk.bf16.gmra.mxu0 %vm257_vm0, %v1212_v10 }
  0x33   : > { %1119 = vmatprep.mubr.msk.bf16.mxu0 %vm257_vm0, %v1213_v11  ;;  %1164 = vmatpush3.bf16.msra.mxu0 %v1227_v21  ;;  %v1230_v21 = vld [vmem:[%s1425_s1 + $0x80] sm:$0xff]  }
  0x34   : > { %1136 = vmatpush3.bf16.msra.mxu1 %v1221_v15  ;;  %1165 = vmatprep.subr.bf16.mxu0 %v1228_v19 }
  0x35   : > { %1137 = vmatprep.subr.bf16.mxu1 %v1222_v16 }
  0x37   : > { %1166 = vmatpush3.bf16.msra.mxu0 %v1228_v19 }
  0x38   : > { %1138 = vmatpush3.bf16.msra.mxu1 %v1222_v16  ;;  %1167 = vmatprep.subr.bf16.mxu0 %v1229_v20 }
  0x3a   : > { %1120 = vmatmul.mubr.msk.bf16.gmra.mxu0 %vm257_vm0, %v1214_v13 }
  0x3b   : > { %1168 = vmatpush3.bf16.msra.mxu0 %v1229_v20 }
  0x3c   : > { %1169 = vmatprep.subr.bf16.mxu0 %v1230_v21 }
  0x3f   : > { %1170 = vmatpush3.bf16.msra.mxu0 %v1230_v21 }
  0xe2   : > { %v1109_v26 = vpop.f32.mrf.mxu0 }
  0xe3   : > { %v325_v32 = vadd.f32 %v1109_v26, %v210_v27  ;;  %v423_v26 = vrot.slane %v1390_v25, %v422_v22 }
  0xe4   : > { %v316_v28 = vpop.f32.mrf.mxu0 }
  0xe5   : > { %v317_v30 = vadd.f32 %v316_v28, %v210_v27  ;;  %v381_v39 = vmax.f32 %v325_v32, 0.0 }
  0xe6   : > { %v1110_v29 = vpop.f32.mrf.mxu0 }
  0xe7   : > { %v328_v31 = vadd.f32 %v1110_v29, %v210_v27  ;;  %v379_v37 = vmax.f32 %v317_v30, 0.0 }
  0xe8   : > { %v319_v33 = vpop.f32.mrf.mxu0 }
  0xe9   : > { %v320_v34 = vadd.f32 %v319_v33, %v210_v27  ;;  %v382_v35 = vmax.f32 %v328_v31, 0.0 }
  0xea   : > { %v1113_v36 = vpop.f32.mrf.mxu0 }
  0xeb   : > { %v380_v38 = vmax.f32 %v320_v34, 0.0  ;;  %v396_v42 = vpack.c.bf16 %v382_v35, %v381_v39  ;;  %v341_v46 = vadd.f32 %v1113_v36, %v210_v27 }
  0xec   : > { %v332_v40 = vpop.f32.mrf.mxu0 }
  0xed   : > { %v395_v41 = vpack.c.bf16 %v380_v38, %v379_v37  ;;  %v333_v44 = vadd.f32 %v332_v40, %v210_v27  ;;  %v385_v53 = vmax.f32 %v341_v46, 0.0 }
  0xee   : > { %v1114_v43 = vpop.f32.mrf.mxu0 }
  0xef   : > { %v344_v45 = vadd.f32 %v1114_v43, %v210_v27  ;;  %1139 = vmatprep.mubr.bf16.mxu1 %v395_v41  ;;  %v383_v51 = vmax.f32 %v333_v44, 0.0 }
  0xf0   : > { %v335_v47 = vpop.f32.mrf.mxu0  ;;  %1140 = vmatmul.mubr.bf16.vlgmr.msra.gmra.mxu1 %v396_v42 }
  0xf1   : > { %v336_v48 = vadd.f32 %v335_v47, %v210_v27  ;;  %v386_v49 = vmax.f32 %v344_v45, 0.0 }
  0xf2   : > { %v1117_v50 = vpop.f32.mrf.mxu0 }
  0xf3   : > { %v384_v52 = vmax.f32 %v336_v48, 0.0  ;;  %v398_v56 = vpack.c.bf16 %v386_v49, %v385_v53  ;;  %v357_v60 = vadd.f32 %v1117_v50, %v210_v27 }
  0xf4   : > { %v348_v54 = vpop.f32.mrf.mxu0 }
  0xf5   : > { %v397_v55 = vpack.c.bf16 %v384_v52, %v383_v51  ;;  %v349_v58 = vadd.f32 %v348_v54, %v210_v27  ;;  %v389_v3 = vmax.f32 %v357_v60, 0.0 }
  0xf6   : > { %v1118_v57 = vpop.f32.mrf.mxu0 }
  0xf7   : > { %v360_v59 = vadd.f32 %v1118_v57, %v210_v27  ;;  %1143 = vmatprep.mubr.bf16.mxu1 %v397_v55  ;;  %v387_v1 = vmax.f32 %v349_v58, 0.0 }
  0xf8   : > { %v351_v61 = vpop.f32.mrf.mxu0  ;;  %1144 = vmatmul.mubr.bf16.gmra.mxu1 %v398_v56 }
  0xf9   : > { %v352_v62 = vadd.f32 %v351_v61, %v210_v27  ;;  %v390_v63 = vmax.f32 %v360_v59, 0.0 }
  0xfa   : > { %v1121_v0 = vpop.f32.mrf.mxu0 }
  0xfb   : > { %v388_v2 = vmax.f32 %v352_v62, 0.0  ;;  %v400_v6 = vpack.c.bf16 %v390_v63, %v389_v3  ;;  %v373_v10 = vadd.f32 %v1121_v0, %v210_v27 }
  0xfc   : > { %v364_v4 = vpop.f32.mrf.mxu0 }
  0xfd   : > { %v399_v5 = vpack.c.bf16 %v388_v2, %v387_v1  ;;  %v365_v8 = vadd.f32 %v364_v4, %v210_v27  ;;  %v393_v16 = vmax.f32 %v373_v10, 0.0 }
  0xfe   : > { %v1122_v7 = vpop.f32.mrf.mxu0 }
  0xff   : > { %v376_v9 = vadd.f32 %v1122_v7, %v210_v27  ;;  %1147 = vmatprep.mubr.bf16.mxu1 %v399_v5  ;;  %v391_v14 = vmax.f32 %v365_v8, 0.0 }
 0x100   : > { %v367_v11 = vpop.f32.mrf.mxu0  ;;  %1148 = vmatmul.mubr.bf16.gmra.mxu1 %v400_v6 }
 0x101   : > { %v368_v12 = vadd.f32 %v367_v11, %v210_v27  ;;  %v394_v13 = vmax.f32 %v376_v9, 0.0 }
 0x103   : > { %v392_v15 = vmax.f32 %v368_v12, 0.0  ;;  %v402_v18 = vpack.c.bf16 %v394_v13, %v393_v16 }
 0x105   : > { %v401_v17 = vpack.c.bf16 %v392_v15, %v391_v14 }
 0x107   : > { %1151 = vmatprep.mubr.bf16.mxu1 %v401_v17 }
 0x108   : > { %1152 = vmatmul.mubr.bf16.gmra.mxu1 %v402_v18  ;;  %v612_v18 = vsub.s32 2, %v1387_v23 }
 0x10a   : > { %v613_v20 = vrot.slane %v1390_v25, %v612_v18 }
 0x1b0   : > { %v1141_v24 = vpop.f32.mrf.mxu1 }
 0x1b1   : > { %v515_v31 = vadd.f32 %v1141_v24, %v423_v26 }
 0x1b2   : > { %v506_v27 = vpop.f32.mrf.mxu1 }
 0x1b3   : > { %v507_v29 = vadd.f32 %v506_v27, %v423_v26  ;;  %v571_v38 = vmax.f32 %v515_v31, 0.0 }
 0x1b4   : > { %v1142_v28 = vpop.f32.mrf.mxu1 }
 0x1b5   : > { %v518_v30 = vadd.f32 %v1142_v28, %v423_v26  ;;  %v569_v36 = vmax.f32 %v507_v29, 0.0 }
 0x1b6   : > { %v509_v32 = vpop.f32.mrf.mxu1 }
 0x1b7   : > { %v510_v33 = vadd.f32 %v509_v32, %v423_v26  ;;  %v572_v34 = vmax.f32 %v518_v30, 0.0 }
 0x1b8   : > { %v1145_v35 = vpop.f32.mrf.mxu1 }
 0x1b9   : > { %v570_v37 = vmax.f32 %v510_v33, 0.0  ;;  %v586_v41 = vpack.c.bf16 %v572_v34, %v571_v38  ;;  %v531_v45 = vadd.f32 %v1145_v35, %v423_v26 }
 0x1ba   : > { %v522_v39 = vpop.f32.mrf.mxu1 }
 0x1bb   : > { %v585_v40 = vpack.c.bf16 %v570_v37, %v569_v36  ;;  %v523_v43 = vadd.f32 %v522_v39, %v423_v26  ;;  %v575_v52 = vmax.f32 %v531_v45, 0.0 }
 0x1bc   : > { %v1146_v42 = vpop.f32.mrf.mxu1 }
 0x1bd   : > { %v534_v44 = vadd.f32 %v1146_v42, %v423_v26  ;;  %1171 = vmatprep.mubr.bf16.mxu0 %v585_v40  ;;  %v573_v50 = vmax.f32 %v523_v43, 0.0 }
 0x1be   : > { %v525_v46 = vpop.f32.mrf.mxu1  ;;  %1172 = vmatmul.mubr.bf16.vlgmr.msra.gmra.mxu0 %v586_v41 }
 0x1bf   : > { %v526_v47 = vadd.f32 %v525_v46, %v423_v26  ;;  %v576_v48 = vmax.f32 %v534_v44, 0.0 }
 0x1c0   : > { %v1149_v49 = vpop.f32.mrf.mxu1 }
 0x1c1   : > { %v574_v51 = vmax.f32 %v526_v47, 0.0  ;;  %v588_v55 = vpack.c.bf16 %v576_v48, %v575_v52  ;;  %v547_v59 = vadd.f32 %v1149_v49, %v423_v26 }
 0x1c2   : > { %v538_v53 = vpop.f32.mrf.mxu1 }
 0x1c3   : > { %v587_v54 = vpack.c.bf16 %v574_v51, %v573_v50  ;;  %v539_v57 = vadd.f32 %v538_v53, %v423_v26  ;;  %v579_v2 = vmax.f32 %v547_v59, 0.0 }
 0x1c4   : > { %v1150_v56 = vpop.f32.mrf.mxu1 }
 0x1c5   : > { %v550_v58 = vadd.f32 %v1150_v56, %v423_v26  ;;  %1175 = vmatprep.mubr.bf16.mxu0 %v587_v54  ;;  %v577_v0 = vmax.f32 %v539_v57, 0.0 }
 0x1c6   : > { %v541_v60 = vpop.f32.mrf.mxu1  ;;  %1176 = vmatmul.mubr.bf16.gmra.mxu0 %v588_v55 }
 0x1c7   : > { %v542_v61 = vadd.f32 %v541_v60, %v423_v26  ;;  %v580_v62 = vmax.f32 %v550_v58, 0.0 }
 0x1c8   : > { %v1153_v63 = vpop.f32.mrf.mxu1 }
 0x1c9   : > { %v578_v1 = vmax.f32 %v542_v61, 0.0  ;;  %v590_v5 = vpack.c.bf16 %v580_v62, %v579_v2  ;;  %v563_v9 = vadd.f32 %v1153_v63, %v423_v26 }
 0x1ca   : > { %v554_v3 = vpop.f32.mrf.mxu1 }
 0x1cb   : > { %v589_v4 = vpack.c.bf16 %v578_v1, %v577_v0  ;;  %v555_v7 = vadd.f32 %v554_v3, %v423_v26  ;;  %v583_v15 = vmax.f32 %v563_v9, 0.0 }
 0x1cc   : > { %v1154_v6 = vpop.f32.mrf.mxu1 }
 0x1cd   : > { %v566_v8 = vadd.f32 %v1154_v6, %v423_v26  ;;  %1179 = vmatprep.mubr.bf16.mxu0 %v589_v4  ;;  %v581_v13 = vmax.f32 %v555_v7, 0.0 }
 0x1ce   : > { %v557_v10 = vpop.f32.mrf.mxu1  ;;  %1180 = vmatmul.mubr.bf16.gmra.mxu0 %v590_v5 }
 0x1cf   : > { %v558_v11 = vadd.f32 %v557_v10, %v423_v26  ;;  %v584_v12 = vmax.f32 %v566_v8, 0.0 }
 0x1d1   : > { %v582_v14 = vmax.f32 %v558_v11, 0.0  ;;  %v592_v17 = vpack.c.bf16 %v584_v12, %v583_v15 }
 0x1d3   : > { %v591_v16 = vpack.c.bf16 %v582_v14, %v581_v13 }
 0x1d5   : > { %1183 = vmatprep.mubr.bf16.mxu0 %v591_v16 }
 0x1d6   : > { %1184 = vmatmul.mubr.bf16.gmra.mxu0 %v592_v17 }
 0x27e   : > { %v1173_v19 = vpop.f32.mrf.mxu0 }
 0x27f   : > { %v705_v24 = vadd.f32 %v1173_v19, %v613_v20 }
 0x280   : > { %v696_v21 = vpop.f32.mrf.mxu0 }
 0x281   : > { %v697_v28 = vadd.f32 %v696_v21, %v613_v20 }
 0x282   : > { %v1174_v22 = vpop.f32.mrf.mxu0 }
 0x283   : > { %v708_v27 = vadd.f32 %v1174_v22, %v613_v20 }
 0x284   : > { %v699_v26 = vpop.f32.mrf.mxu0 }
 0x285   : > { %v1025_v29 = vpack.c.bf16 %v708_v27, %v705_v24  ;;  %v700_v23 = vadd.f32 %v699_v26, %v613_v20 }
 0x286   : > { %v1177_v30 = vpop.f32.mrf.mxu0 }
 0x287   : > { %1057 = vst [vmem:[%s1411_s11 + $0x8] sm:$0xff] %v1025_v29   ;;  %v1020_v25 = vpack.c.bf16 %v700_v23, %v697_v28  ;;  %v721_v33 = vadd.f32 %v1177_v30, %v613_v20 }
 0x288   : > { %v712_v31 = vpop.f32.mrf.mxu0 }
 0x289   : > { %1021 = vst [vmem:[%s1411_s11] sm:$0xff] %v1020_v25   ;;  %v713_v36 = vadd.f32 %v712_v31, %v613_v20 }
 0x28a   : > { %v1178_v32 = vpop.f32.mrf.mxu0 }
 0x28b   : > { %v724_v34 = vadd.f32 %v1178_v32, %v613_v20 }
 0x28c   : > { %v715_v35 = vpop.f32.mrf.mxu0 }
 0x28d   : > { %v1035_v37 = vpack.c.bf16 %v724_v34, %v721_v33  ;;  %v716_v38 = vadd.f32 %v715_v35, %v613_v20 }
 0x28e   : > { %v1181_v39 = vpop.f32.mrf.mxu0 }
 0x28f   : > { %1059 = vst [vmem:[%s1411_s11 + $0x18] sm:$0xff] %v1035_v37   ;;  %v1030_v40 = vpack.c.bf16 %v716_v38, %v713_v36  ;;  %v737_v43 = vadd.f32 %v1181_v39, %v613_v20 }
 0x290   : > { %v728_v41 = vpop.f32.mrf.mxu0 }
 0x291   : > { %1058 = vst [vmem:[%s1411_s11 + $0x10] sm:$0xff] %v1030_v40   ;;  %v729_v46 = vadd.f32 %v728_v41, %v613_v20 }
 0x292   : > { %v1182_v42 = vpop.f32.mrf.mxu0 }
 0x293   : > { %v740_v44 = vadd.f32 %v1182_v42, %v613_v20 }
 0x294   : > { %v731_v45 = vpop.f32.mrf.mxu0 }
 0x295   : > { %v1045_v47 = vpack.c.bf16 %v740_v44, %v737_v43  ;;  %v732_v48 = vadd.f32 %v731_v45, %v613_v20 }
 0x296   : > { %v1185_v49 = vpop.f32.mrf.mxu0 }
 0x297   : > { %1061 = vst [vmem:[%s1411_s11 + $0x28] sm:$0xff] %v1045_v47   ;;  %v1040_v50 = vpack.c.bf16 %v732_v48, %v729_v46  ;;  %v753_v53 = vadd.f32 %v1185_v49, %v613_v20 }
 0x298   : > { %v744_v51 = vpop.f32.mrf.mxu0 }
 0x299   : > { %1060 = vst [vmem:[%s1411_s11 + $0x20] sm:$0xff] %v1040_v50   ;;  %v745_v56 = vadd.f32 %v744_v51, %v613_v20 }
 0x29a   : > { %v1186_v52 = vpop.f32.mrf.mxu0 }
 0x29b   : > { %v756_v54 = vadd.f32 %v1186_v52, %v613_v20 }
 0x29c   : > { %v747_v55 = vpop.f32.mrf.mxu0 }
 0x29d   : > { %v1055_v57 = vpack.c.bf16 %v756_v54, %v753_v53  ;;  %v748_v58 = vadd.f32 %v747_v55, %v613_v20 }
 0x29f   : > { %1063 = vst [vmem:[%s1411_s11 + $0x38] sm:$0xff] %v1055_v57   ;;  %v1050_v59 = vpack.c.bf16 %v748_v58, %v745_v56 }
 0x2a1   : > { %1062 = vst [vmem:[%s1411_s11 + $0x30] sm:$0xff] %v1050_v59  }
 0x2a2 PF: > { %s14_s12 = sadd.s32 1, %s1267_s12  }
 0x2a3   : > { %p11_p1 = scmp.ge.s32.totalorder %s14_s12, 4  }
 0x2a5   :  { %13 = sbr.rel (!%p11_p1) target bundleno = 1 (0x1), region = 69 }
 0x2aa   :  { %861 = vsyncpa [#allocation3], 1 }
 0x2ab   :  { %863 = vsyncpa [#allocation3 + $0x1], 1 }

</bundles_post_ra>
